<compile_context>
chip_gen: v6e
topology: v6e:2x2x1
jax: 0.10.0
libtpu: 0.0.40
codegen_flags: <defaults>
</compile_context>

<pallas_src>
import jax
import jax.numpy as jnp
import numpy as np
from jax.experimental import pallas as pl
from jax.experimental.pallas import tpu as pltpu


def _make_kernel(W, L, Cp):
    def kernel(x_ref, w1_ref, w2_ref, w3_ref, b_ref, m_ref, al_ref,
               o_ref, slab_ref):
        b1 = b_ref[:, 0:1]                       # (Cp, 1) lane-broadcast bias
        b2 = b_ref[:, 1:2]
        b3 = b_ref[:, 2:3]

        # ---- conv1 (1x1, BN1 folded) + PReLU1: bf16 operands, f32 acc ----
        h = jnp.dot(w1_ref[...], x_ref[0].astype(jnp.bfloat16),
                    preferred_element_type=jnp.float32) + b1
        h = jnp.where(h > 0, h, al_ref[0] * h)

        # ---- conv2 (3x3, stride 1, pad 1) as im2col over 9 rolled taps ----
        # Border handling: multiply by host-precomputed per-tap 0/1 masks
        # (per-image coordinates, so wrapped / cross-image lanes become 0).
        for dy in range(3):
            for dx in range(3):
                t = dy * 3 + dx
                off = (dy - 1) * W + (dx - 1)    # static lane offset
                if off == 0:
                    tap = h
                else:
                    tap = pltpu.roll(h, shift=(-off) % L, axis=1)
                if t != 4:
                    r = t if t < 4 else t - 1
                    tap = tap * m_ref[r:r + 1, :]
                slab_ref[t * Cp:(t + 1) * Cp, :] = tap.astype(jnp.bfloat16)

        # single fused K = 9*Cp matmul (BN2 folded) + bias + PReLU2
        h2 = jnp.dot(w2_ref[...], slab_ref[...],
                     preferred_element_type=jnp.float32) + b2
        h2 = jnp.where(h2 > 0, h2, al_ref[1] * h2)

        # ---- conv3 (1x1, BN3 folded) + bias + residual + PReLU3 ----
        h3 = jnp.dot(w3_ref[...], h2.astype(jnp.bfloat16),
                     preferred_element_type=jnp.float32) + b3 + x_ref[0]
        o_ref[0] = jnp.where(h3 > 0, h3, al_ref[2] * h3)

    return kernel


def _images_per_step(N, HW, target_lanes=2048, max_lanes=16384):
    """Largest divisor of N reaching ~target_lanes lanes per grid step.

    If one image already reaches the target, keep one image per step so the
    grid keeps >=2 parallel steps (v7x has two TensorCores)."""
    if HW >= target_lanes:
        return 1
    best = 1
    for d in range(1, N + 1):
        if N % d:
            continue
        if d * HW > max_lanes:
            break
        best = d
        if d * HW >= target_lanes:
            break
    return best


def bottleneck_pallas(x_nchw, w1, w2, w3, gammas, betas, means, variances,
                      alphas, eps=1e-5):
    N, C, H, W = x_nchw.shape
    HW = H * W
    ips = _images_per_step(N, HW)
    G = N // ips
    L = ips * HW
    Cp = ((C + 15) // 16) * 16      # bf16 sublane-packing alignment

    # NCHW -> (G, Cp, L): zero-padded channels on sublanes, the flattened
    # (images_per_step, H*W) batch/spatial block on lanes (lane-dense I/O).
    x = x_nchw.reshape(N, C, HW).astype(jnp.float32)
    x = x.reshape(G, ips, C, HW).transpose(0, 2, 1, 3).reshape(G, C, L)
    x = jnp.pad(x, ((0, 0), (0, Cp - C), (0, 0)))

    # Fold eval-mode BatchNorm into conv weights/bias (per output channel),
    # zero-pad channel dims to Cp, cast the matmul operands to bf16.
    scales = gammas / jnp.sqrt(variances + eps)          # (3, C)
    biases = betas - means * scales                      # (3, C)
    b_cols = jnp.pad(biases.T.astype(jnp.float32),
                     ((0, Cp - C), (0, 0)))              # (Cp, 3) f32

    pad2 = ((0, Cp - C), (0, Cp - C))
    w1m = jnp.pad(w1[:, :, 0, 0] * scales[0][:, None], pad2).astype(jnp.bfloat16)
    w3m = jnp.pad(w3[:, :, 0, 0] * scales[2][:, None], pad2).astype(jnp.bfloat16)
    # (C_out, C_in, 3, 3) -> (C_out, dy, dx, C_in), pad channels to Cp,
    # flatten to (Cp, 9*Cp): column block t = dy*3+dx matches slab rows
    # [t*Cp, (t+1)*Cp).
    w2m = jnp.transpose(w2 * scales[1][:, None, None, None], (0, 2, 3, 1))
    w2m = jnp.pad(w2m, ((0, Cp - C), (0, 0), (0, 0), (0, Cp - C)))
    w2m = w2m.reshape(Cp, 9 * Cp).astype(jnp.bfloat16)

    # Hoisted border masks: per-tap 0/1 multipliers (8 rows, one per
    # off-center tap), indexed by per-image lane coordinate q = p mod HW.
    p = jnp.arange(L, dtype=jnp.int32)
    q = p % HW
    col = q % W
    left_ok = (col > 0).astype(jnp.float32)           # source col x-1 valid
    right_ok = (col < W - 1).astype(jnp.float32)      # source col x+1 valid
    top_ok = (q >= W).astype(jnp.float32)             # source row y-1 valid
    bot_ok = (q < (H - 1) * W).astype(jnp.float32)    # source row y+1 valid
    rows = []
    for dy in range(3):
        for dx in range(3):
            if dy == 1 and dx == 1:
                continue
            m = jnp.ones((L,), jnp.float32)
            if dy == 0:
                m = m * top_ok
            elif dy == 2:
                m = m * bot_ok
            if dx == 0:
                m = m * left_ok
            elif dx == 2:
                m = m * right_ok
            rows.append(m)
    mults = jnp.stack(rows, axis=0)                   # (8, L) f32

    alphas = alphas.astype(jnp.float32)
    kernel = _make_kernel(W, L, Cp)

    out = pl.pallas_call(
        kernel,
        out_shape=jax.ShapeDtypeStruct((G, Cp, L), jnp.float32),
        grid_spec=pltpu.PrefetchScalarGridSpec(
            num_scalar_prefetch=0,
            grid=(G,),
            in_specs=[
                pl.BlockSpec((1, Cp, L), lambda g: (g, 0, 0)),      # x (f32)
                pl.BlockSpec((Cp, Cp), lambda g: (0, 0)),           # w1 (bf16)
                pl.BlockSpec((Cp, 9 * Cp), lambda g: (0, 0)),       # w2 (bf16)
                pl.BlockSpec((Cp, Cp), lambda g: (0, 0)),           # w3 (bf16)
                pl.BlockSpec((Cp, 3), lambda g: (0, 0)),            # BN biases
                pl.BlockSpec((8, L), lambda g: (0, 0)),             # tap masks
                pl.BlockSpec(memory_space=pltpu.MemorySpace.SMEM),  # alphas
            ],
            out_specs=pl.BlockSpec((1, Cp, L), lambda g: (g, 0, 0)),
            scratch_shapes=[pltpu.VMEM((9 * Cp, L), jnp.bfloat16)],  # im2col
        ),
        compiler_params=pltpu.CompilerParams(
            dimension_semantics=("parallel",)),
    )(x, w1m, w2m, w3m, b_cols, mults, alphas)

    out = out[:, :C, :].reshape(G, C, ips, HW)
    return out.transpose(0, 2, 1, 3).reshape(N, C, H, W)


def bottleneck_ref(x, w1, w2, w3, gammas, betas, means, variances, alphas,
                   eps=1e-5):
    """Pure-JAX reference (same eval-mode BN semantics), f32 throughout."""
    def conv(z, w, pad):
        return jax.lax.conv_general_dilated(
            z, w, window_strides=(1, 1), padding=[(pad, pad), (pad, pad)],
            dimension_numbers=('NCHW', 'OIHW', 'NCHW'))

    def bn(z, i):
        g, b, m, v = gammas[i], betas[i], means[i], variances[i]
        s = g / jnp.sqrt(v + eps)
        return (z - m[None, :, None, None]) * s[None, :, None, None] \
            + b[None, :, None, None]

    def prelu(z, a):
        return jnp.where(z > 0, z, a * z)

    h = prelu(bn(conv(x, w1, 0), 0), alphas[0])
    h = prelu(bn(conv(h, w2, 1), 1), alphas[1])
    h = bn(conv(h, w3, 0), 2) + x
    return prelu(h, alphas[2])


if __name__ == "__main__":
    key = jax.random.PRNGKey(0)
    N, C, H, W = 2, 4, 16, 16
    ks = jax.random.split(key, 4)

    x = jax.random.normal(ks[0], (N, C, H, W), jnp.float32)
    # conv weights (OIHW), deterministic
    w1 = jax.random.normal(ks[1], (C, C, 1, 1), jnp.float32) * 0.3
    w2 = jax.random.normal(ks[2], (C, C, 3, 3), jnp.float32) * 0.15
    w3 = jax.random.normal(ks[3], (C, C, 1, 1), jnp.float32) * 0.3
    # BatchNorm parameters / running stats (deterministic, non-trivial)
    gammas = 1.0 + 0.05 * jnp.arange(3 * C, dtype=jnp.float32).reshape(3, C)
    betas = 0.01 * jnp.arange(3 * C, dtype=jnp.float32).reshape(3, C) - 0.05
    means = 0.02 * jnp.arange(3 * C, dtype=jnp.float32).reshape(3, C)
    variances = 1.0 + 0.1 * jnp.arange(3 * C, dtype=jnp.float32).reshape(3, C)
    # PReLU: nn.PReLU() default single-parameter init = 0.25
    alphas = jnp.array([0.25, 0.25, 0.25], jnp.float32)

    out = bottleneck_pallas(x, w1, w2, w3, gammas, betas, means, variances,
                            alphas)
    out = jax.block_until_ready(out)

    ref = bottleneck_ref(x, w1, w2, w3, gammas, betas, means, variances,
                         alphas)
    assert out.shape == (N, C, H, W)
    # bf16 matmul operands (f32 accumulation) -> looser tolerance than pure f32.
    np.testing.assert_allclose(np.asarray(out), np.asarray(ref),
                               rtol=5e-2, atol=5e-2)
    print("KERNEL_OK")
</pallas_src>

<mosaic_0001>
module attributes {stable_mosaic.version = 11 : i64} {
  func.func @kernel(%arg0: i32, %arg1: memref<1x16x512xf32, #tpu.memory_space<vmem>>, %arg2: memref<16x16xbf16, #tpu.memory_space<vmem>>, %arg3: memref<16x144xbf16, #tpu.memory_space<vmem>>, %arg4: memref<16x16xbf16, #tpu.memory_space<vmem>>, %arg5: memref<16x3xf32, #tpu.memory_space<vmem>>, %arg6: memref<8x512xf32, #tpu.memory_space<vmem>>, %arg7: memref<3xf32, #tpu.memory_space<smem>>, %arg8: memref<1x16x512xf32, #tpu.memory_space<vmem>>, %arg9: memref<144x512xbf16, #tpu.memory_space<vmem>>) attributes {dimension_semantics = [#tpu.dimension_semantics<parallel>], iteration_bounds = array<i64: 1>, scalar_prefetch = 0 : i64, scratch_operands = 1 : i64, tpu.core_type = #tpu.core_type<tc>, window_params = [{transform_indices = @transform_0, window_bounds = array<i64: 1, 16, 512>}, {pipeline_mode = #tpu.pipeline_mode<synchronous>, transform_indices = @transform_1, window_bounds = array<i64: 16, 16>}, {pipeline_mode = #tpu.pipeline_mode<synchronous>, transform_indices = @transform_2, window_bounds = array<i64: 16, 144>}, {pipeline_mode = #tpu.pipeline_mode<synchronous>, transform_indices = @transform_3, window_bounds = array<i64: 16, 16>}, {pipeline_mode = #tpu.pipeline_mode<synchronous>, transform_indices = @transform_4, window_bounds = array<i64: 16, 3>}, {pipeline_mode = #tpu.pipeline_mode<synchronous>, transform_indices = @transform_5, window_bounds = array<i64: 8, 512>}, {transform_indices = @transform_6, window_bounds = array<i64: 3>}, {transform_indices = @transform_7, window_bounds = array<i64: 1, 16, 512>}]} {
    %c0 = arith.constant 0 : index
    %c0_0 = arith.constant 0 : index
    %0 = vector.load %arg5[%c0, %c0_0] : memref<16x3xf32, #tpu.memory_space<vmem>>, vector<16x1xf32>
    %c0_1 = arith.constant 0 : index
    %c1 = arith.constant 1 : index
    %1 = vector.load %arg5[%c0_1, %c1] : memref<16x3xf32, #tpu.memory_space<vmem>>, vector<16x1xf32>
    %c0_2 = arith.constant 0 : index
    %c2 = arith.constant 2 : index
    %2 = vector.load %arg5[%c0_2, %c2] : memref<16x3xf32, #tpu.memory_space<vmem>>, vector<16x1xf32>
    %c0_3 = arith.constant 0 : index
    %c0_4 = arith.constant 0 : index
    %3 = vector.load %arg2[%c0_3, %c0_4] : memref<16x16xbf16, #tpu.memory_space<vmem>>, vector<16x16xbf16>
    %c0_5 = arith.constant 0 : index
    %c0_6 = arith.constant 0 : index
    %c0_7 = arith.constant 0 : index
    %4 = vector.load %arg1[%c0_5, %c0_6, %c0_7] : memref<1x16x512xf32, #tpu.memory_space<vmem>>, vector<1x16x512xf32>
    %5 = vector.shape_cast %4 : vector<1x16x512xf32> to vector<16x512xf32>
    %6 = arith.truncf %5 : vector<16x512xf32> to vector<16x512xbf16>
    %cst = arith.constant dense<0.000000e+00> : vector<16x512xf32>
    %7 = tpu.matmul %3, %6, %cst {dimension_numbers = #tpu.dot_dimension_numbers<[1], [0], [0], [1], [0, 0, 1, 1], [], []>} : vector<16x16xbf16>, vector<16x512xbf16>, vector<16x512xf32> -> vector<16x512xf32>
    %8 = vector.broadcast %0 : vector<16x1xf32> to vector<16x512xf32>
    %9 = arith.addf %7, %8 : vector<16x512xf32>
    %cst_8 = arith.constant 0.000000e+00 : f32
    %10 = vector.broadcast %cst_8 : f32 to vector<16x512xf32>
    %11 = arith.cmpf ogt, %9, %10 : vector<16x512xf32>
    %c0_9 = arith.constant 0 : index
    %12 = memref.load %arg7[%c0_9] : memref<3xf32, #tpu.memory_space<smem>>
    %13 = vector.broadcast %12 : f32 to vector<16x512xf32>
    %14 = arith.mulf %13, %9 : vector<16x512xf32>
    %15 = arith.select %11, %9, %14 : vector<16x512xi1>, vector<16x512xf32>
    %c17_i32 = arith.constant 17 : i32
    %16 = tpu.dynamic_rotate %15 by %c17_i32 dim 1 : vector<16x512xf32>, i32 -> vector<16x512xf32>
    %c0_10 = arith.constant 0 : index
    %c0_11 = arith.constant 0 : index
    %17 = vector.load %arg6[%c0_10, %c0_11] : memref<8x512xf32, #tpu.memory_space<vmem>>, vector<1x512xf32>
    %18 = vector.broadcast %17 : vector<1x512xf32> to vector<16x512xf32>
    %19 = arith.mulf %16, %18 : vector<16x512xf32>
    %20 = arith.truncf %19 : vector<16x512xf32> to vector<16x512xbf16>
    %c0_12 = arith.constant 0 : index
    %c0_13 = arith.constant 0 : index
    %21 = vector.load %arg9[%c0_12, %c0_13] : memref<144x512xbf16, #tpu.memory_space<vmem>>, vector<16x512xbf16>
    tpu.vector_store %arg9[%c0_12, %c0_13], %20 {strides = array<i32>} : memref<144x512xbf16, #tpu.memory_space<vmem>>, vector<16x512xbf16>,
    %c16_i32 = arith.constant 16 : i32
    %22 = tpu.dynamic_rotate %15 by %c16_i32 dim 1 : vector<16x512xf32>, i32 -> vector<16x512xf32>
    %c1_14 = arith.constant 1 : index
    %c0_15 = arith.constant 0 : index
    %23 = vector.load %arg6[%c1_14, %c0_15] : memref<8x512xf32, #tpu.memory_space<vmem>>, vector<1x512xf32>
    %24 = vector.broadcast %23 : vector<1x512xf32> to vector<16x512xf32>
    %25 = arith.mulf %22, %24 : vector<16x512xf32>
    %26 = arith.truncf %25 : vector<16x512xf32> to vector<16x512xbf16>
    %c16 = arith.constant 16 : index
    %c0_16 = arith.constant 0 : index
    %27 = vector.load %arg9[%c16, %c0_16] : memref<144x512xbf16, #tpu.memory_space<vmem>>, vector<16x512xbf16>
    tpu.vector_store %arg9[%c16, %c0_16], %26 {strides = array<i32>} : memref<144x512xbf16, #tpu.memory_space<vmem>>, vector<16x512xbf16>,
    %c15_i32 = arith.constant 15 : i32
    %28 = tpu.dynamic_rotate %15 by %c15_i32 dim 1 : vector<16x512xf32>, i32 -> vector<16x512xf32>
    %c2_17 = arith.constant 2 : index
    %c0_18 = arith.constant 0 : index
    %29 = vector.load %arg6[%c2_17, %c0_18] : memref<8x512xf32, #tpu.memory_space<vmem>>, vector<1x512xf32>
    %30 = vector.broadcast %29 : vector<1x512xf32> to vector<16x512xf32>
    %31 = arith.mulf %28, %30 : vector<16x512xf32>
    %32 = arith.truncf %31 : vector<16x512xf32> to vector<16x512xbf16>
    %c32 = arith.constant 32 : index
    %c0_19 = arith.constant 0 : index
    %33 = vector.load %arg9[%c32, %c0_19] : memref<144x512xbf16, #tpu.memory_space<vmem>>, vector<16x512xbf16>
    tpu.vector_store %arg9[%c32, %c0_19], %32 {strides = array<i32>} : memref<144x512xbf16, #tpu.memory_space<vmem>>, vector<16x512xbf16>,
    %c1_i32 = arith.constant 1 : i32
    %34 = tpu.dynamic_rotate %15 by %c1_i32 dim 1 : vector<16x512xf32>, i32 -> vector<16x512xf32>
    %c3 = arith.constant 3 : index
    %c0_20 = arith.constant 0 : index
    %35 = vector.load %arg6[%c3, %c0_20] : memref<8x512xf32, #tpu.memory_space<vmem>>, vector<1x512xf32>
    %36 = vector.broadcast %35 : vector<1x512xf32> to vector<16x512xf32>
    %37 = arith.mulf %34, %36 : vector<16x512xf32>
    %38 = arith.truncf %37 : vector<16x512xf32> to vector<16x512xbf16>
    %c48 = arith.constant 48 : index
    %c0_21 = arith.constant 0 : index
    %39 = vector.load %arg9[%c48, %c0_21] : memref<144x512xbf16, #tpu.memory_space<vmem>>, vector<16x512xbf16>
    tpu.vector_store %arg9[%c48, %c0_21], %38 {strides = array<i32>} : memref<144x512xbf16, #tpu.memory_space<vmem>>, vector<16x512xbf16>,
    %40 = arith.truncf %15 : vector<16x512xf32> to vector<16x512xbf16>
    %c64 = arith.constant 64 : index
    %c0_22 = arith.constant 0 : index
    %41 = vector.load %arg9[%c64, %c0_22] : memref<144x512xbf16, #tpu.memory_space<vmem>>, vector<16x512xbf16>
    tpu.vector_store %arg9[%c64, %c0_22], %40 {strides = array<i32>} : memref<144x512xbf16, #tpu.memory_space<vmem>>, vector<16x512xbf16>,
    %c511_i32 = arith.constant 511 : i32
    %42 = tpu.dynamic_rotate %15 by %c511_i32 dim 1 : vector<16x512xf32>, i32 -> vector<16x512xf32>
    %c4 = arith.constant 4 : index
    %c0_23 = arith.constant 0 : index
    %43 = vector.load %arg6[%c4, %c0_23] : memref<8x512xf32, #tpu.memory_space<vmem>>, vector<1x512xf32>
    %44 = vector.broadcast %43 : vector<1x512xf32> to vector<16x512xf32>
    %45 = arith.mulf %42, %44 : vector<16x512xf32>
    %46 = arith.truncf %45 : vector<16x512xf32> to vector<16x512xbf16>
    %c80 = arith.constant 80 : index
    %c0_24 = arith.constant 0 : index
    %47 = vector.load %arg9[%c80, %c0_24] : memref<144x512xbf16, #tpu.memory_space<vmem>>, vector<16x512xbf16>
    tpu.vector_store %arg9[%c80, %c0_24], %46 {strides = array<i32>} : memref<144x512xbf16, #tpu.memory_space<vmem>>, vector<16x512xbf16>,
    %c497_i32 = arith.constant 497 : i32
    %48 = tpu.dynamic_rotate %15 by %c497_i32 dim 1 : vector<16x512xf32>, i32 -> vector<16x512xf32>
    %c5 = arith.constant 5 : index
    %c0_25 = arith.constant 0 : index
    %49 = vector.load %arg6[%c5, %c0_25] : memref<8x512xf32, #tpu.memory_space<vmem>>, vector<1x512xf32>
    %50 = vector.broadcast %49 : vector<1x512xf32> to vector<16x512xf32>
    %51 = arith.mulf %48, %50 : vector<16x512xf32>
    %52 = arith.truncf %51 : vector<16x512xf32> to vector<16x512xbf16>
    %c96 = arith.constant 96 : index
    %c0_26 = arith.constant 0 : index
    %53 = vector.load %arg9[%c96, %c0_26] : memref<144x512xbf16, #tpu.memory_space<vmem>>, vector<16x512xbf16>
    tpu.vector_store %arg9[%c96, %c0_26], %52 {strides = array<i32>} : memref<144x512xbf16, #tpu.memory_space<vmem>>, vector<16x512xbf16>,
    %c496_i32 = arith.constant 496 : i32
    %54 = tpu.dynamic_rotate %15 by %c496_i32 dim 1 : vector<16x512xf32>, i32 -> vector<16x512xf32>
    %c6 = arith.constant 6 : index
    %c0_27 = arith.constant 0 : index
    %55 = vector.load %arg6[%c6, %c0_27] : memref<8x512xf32, #tpu.memory_space<vmem>>, vector<1x512xf32>
    %56 = vector.broadcast %55 : vector<1x512xf32> to vector<16x512xf32>
    %57 = arith.mulf %54, %56 : vector<16x512xf32>
    %58 = arith.truncf %57 : vector<16x512xf32> to vector<16x512xbf16>
    %c112 = arith.constant 112 : index
    %c0_28 = arith.constant 0 : index
    %59 = vector.load %arg9[%c112, %c0_28] : memref<144x512xbf16, #tpu.memory_space<vmem>>, vector<16x512xbf16>
    tpu.vector_store %arg9[%c112, %c0_28], %58 {strides = array<i32>} : memref<144x512xbf16, #tpu.memory_space<vmem>>, vector<16x512xbf16>,
    %c495_i32 = arith.constant 495 : i32
    %60 = tpu.dynamic_rotate %15 by %c495_i32 dim 1 : vector<16x512xf32>, i32 -> vector<16x512xf32>
    %c7 = arith.constant 7 : index
    %c0_29 = arith.constant 0 : index
    %61 = vector.load %arg6[%c7, %c0_29] : memref<8x512xf32, #tpu.memory_space<vmem>>, vector<1x512xf32>
    %62 = vector.broadcast %61 : vector<1x512xf32> to vector<16x512xf32>
    %63 = arith.mulf %60, %62 : vector<16x512xf32>
    %64 = arith.truncf %63 : vector<16x512xf32> to vector<16x512xbf16>
    %c128 = arith.constant 128 : index
    %c0_30 = arith.constant 0 : index
    %65 = vector.load %arg9[%c128, %c0_30] : memref<144x512xbf16, #tpu.memory_space<vmem>>, vector<16x512xbf16>
    tpu.vector_store %arg9[%c128, %c0_30], %64 {strides = array<i32>} : memref<144x512xbf16, #tpu.memory_space<vmem>>, vector<16x512xbf16>,
    %c0_31 = arith.constant 0 : index
    %c0_32 = arith.constant 0 : index
    %66 = vector.load %arg3[%c0_31, %c0_32] : memref<16x144xbf16, #tpu.memory_space<vmem>>, vector<16x144xbf16>
    %c0_33 = arith.constant 0 : index
    %c0_34 = arith.constant 0 : index
    %67 = vector.load %arg9[%c0_33, %c0_34] : memref<144x512xbf16, #tpu.memory_space<vmem>>, vector<144x512xbf16>
    %cst_35 = arith.constant dense<0.000000e+00> : vector<16x512xf32>
    %68 = tpu.matmul %66, %67, %cst_35 {dimension_numbers = #tpu.dot_dimension_numbers<[1], [0], [0], [1], [0, 0, 1, 1], [], []>} : vector<16x144xbf16>, vector<144x512xbf16>, vector<16x512xf32> -> vector<16x512xf32>
    %69 = vector.broadcast %1 : vector<16x1xf32> to vector<16x512xf32>
    %70 = arith.addf %68, %69 : vector<16x512xf32>
    %cst_36 = arith.constant 0.000000e+00 : f32
    %71 = vector.broadcast %cst_36 : f32 to vector<16x512xf32>
    %72 = arith.cmpf ogt, %70, %71 : vector<16x512xf32>
    %c1_37 = arith.constant 1 : index
    %73 = memref.load %arg7[%c1_37] : memref<3xf32, #tpu.memory_space<smem>>
    %74 = vector.broadcast %73 : f32 to vector<16x512xf32>
    %75 = arith.mulf %74, %70 : vector<16x512xf32>
    %76 = arith.select %72, %70, %75 : vector<16x512xi1>, vector<16x512xf32>
    %c0_38 = arith.constant 0 : index
    %c0_39 = arith.constant 0 : index
    %77 = vector.load %arg4[%c0_38, %c0_39] : memref<16x16xbf16, #tpu.memory_space<vmem>>, vector<16x16xbf16>
    %78 = arith.truncf %76 : vector<16x512xf32> to vector<16x512xbf16>
    %cst_40 = arith.constant dense<0.000000e+00> : vector<16x512xf32>
    %79 = tpu.matmul %77, %78, %cst_40 {dimension_numbers = #tpu.dot_dimension_numbers<[1], [0], [0], [1], [0, 0, 1, 1], [], []>} : vector<16x16xbf16>, vector<16x512xbf16>, vector<16x512xf32> -> vector<16x512xf32>
    %80 = vector.broadcast %2 : vector<16x1xf32> to vector<16x512xf32>
    %81 = arith.addf %79, %80 : vector<16x512xf32>
    %c0_41 = arith.constant 0 : index
    %c0_42 = arith.constant 0 : index
    %c0_43 = arith.constant 0 : index
    %82 = vector.load %arg1[%c0_41, %c0_42, %c0_43] : memref<1x16x512xf32, #tpu.memory_space<vmem>>, vector<1x16x512xf32>
    %83 = vector.shape_cast %82 : vector<1x16x512xf32> to vector<16x512xf32>
    %84 = arith.addf %81, %83 : vector<16x512xf32>
    %cst_44 = arith.constant 0.000000e+00 : f32
    %85 = vector.broadcast %cst_44 : f32 to vector<16x512xf32>
    %86 = arith.cmpf ogt, %84, %85 : vector<16x512xf32>
    %c2_45 = arith.constant 2 : index
    %87 = memref.load %arg7[%c2_45] : memref<3xf32, #tpu.memory_space<smem>>
    %88 = vector.broadcast %87 : f32 to vector<16x512xf32>
    %89 = arith.mulf %88, %84 : vector<16x512xf32>
    %90 = arith.select %86, %84, %89 : vector<16x512xi1>, vector<16x512xf32>
    %c0_46 = arith.constant 0 : index
    %c0_47 = arith.constant 0 : index
    %c0_48 = arith.constant 0 : index
    %91 = vector.load %arg8[%c0_46, %c0_47, %c0_48] : memref<1x16x512xf32, #tpu.memory_space<vmem>>, vector<1x16x512xf32>
    %92 = vector.shape_cast %91 : vector<1x16x512xf32> to vector<16x512xf32>
    %93 = vector.shape_cast %90 : vector<16x512xf32> to vector<1x16x512xf32>
    tpu.vector_store %arg8[%c0_46, %c0_47, %c0_48], %93 {strides = array<i32>} : memref<1x16x512xf32, #tpu.memory_space<vmem>>, vector<1x16x512xf32>,
    return
  }
  func.func @transform_0(%arg0: i32) -> (i32, i32, i32) {
    %c0_i32 = arith.constant 0 : i32
    %c0_i32_0 = arith.constant 0 : i32
    %c0_i32_1 = arith.constant 0 : i32
    return %arg0, %c0_i32, %c0_i32_0 : i32, i32, i32
  }
  func.func @transform_1(%arg0: i32) -> (i32, i32) {
    %c0_i32 = arith.constant 0 : i32
    %c0_i32_0 = arith.constant 0 : i32
    %c0_i32_1 = arith.constant 0 : i32
    return %c0_i32, %c0_i32_0 : i32, i32
  }
  func.func @transform_2(%arg0: i32) -> (i32, i32) {
    %c0_i32 = arith.constant 0 : i32
    %c0_i32_0 = arith.constant 0 : i32
    %c0_i32_1 = arith.constant 0 : i32
    return %c0_i32, %c0_i32_0 : i32, i32
  }
  func.func @transform_3(%arg0: i32) -> (i32, i32) {
    %c0_i32 = arith.constant 0 : i32
    %c0_i32_0 = arith.constant 0 : i32
    %c0_i32_1 = arith.constant 0 : i32
    return %c0_i32, %c0_i32_0 : i32, i32
  }
  func.func @transform_4(%arg0: i32) -> (i32, i32) {
    %c0_i32 = arith.constant 0 : i32
    %c0_i32_0 = arith.constant 0 : i32
    %c0_i32_1 = arith.constant 0 : i32
    return %c0_i32, %c0_i32_0 : i32, i32
  }
  func.func @transform_5(%arg0: i32) -> (i32, i32) {
    %c0_i32 = arith.constant 0 : i32
    %c0_i32_0 = arith.constant 0 : i32
    %c0_i32_1 = arith.constant 0 : i32
    return %c0_i32, %c0_i32_0 : i32, i32
  }
  func.func @transform_6(%arg0: i32) -> i32 {
    %c0_i32 = arith.constant 0 : i32
    %c0_i32_0 = arith.constant 0 : i32
    return %c0_i32 : i32
  }
  func.func @transform_7(%arg0: i32) -> (i32, i32, i32) {
    %c0_i32 = arith.constant 0 : i32
    %c0_i32_0 = arith.constant 0 : i32
    %c0_i32_1 = arith.constant 0 : i32
    return %arg0, %c0_i32, %c0_i32_0 : i32, i32, i32
  }
}

</mosaic_0001>

<bundles_post_ra>
// kernel: tpu_custom_call.1
= control target key start
LH: loop header
LB: loop body
LE: loop exit
PB: predicated region body
PF: predicated region fallthrough
CT: control target
= control target key end

     0   :  { %12 = vsyncpa [#allocation4], 0  ;;  %s2344_s0 = inlined_call_operand.hbm [shape: f32[1,16,512], index: 0, kind: input, shape index: {}]   ;;  %s2345_s1 = inlined_call_operand.hbm [shape: bf16[16,16], index: 1, kind: input, shape index: {}]   ;;  %s2346_s2 = inlined_call_operand.vmem [shape: bf16[16,144], index: 2, kind: input, shape index: {}]   ;;  %s2347_s3 = inlined_call_operand.vmem [shape: bf16[16,16], index: 3, kind: input, shape index: {}]   ;;  %s2348_s4 = inlined_call_operand.vmem [shape: f32[16,3], index: 4, kind: input, shape index: {}]   ;;  %s2349_s5 = inlined_call_operand.hbm [shape: f32[8,512], index: 5, kind: input, shape index: {}]   ;;  %s2350_s6 = inlined_call_operand.vmem [shape: f32[3], index: 6, kind: input, shape index: {}]   ;;  %s2351_s7 = inlined_call_operand.hbm [shape: f32[1,16,512], index: 7, kind: output, shape index: {}]  }
   0x1   :  { %13 = vsyncpa [#allocation8], 0 }
   0x2   :  { %14 = vsyncpa [#allocation6], 0 }
   0x3   :  { %15 = vsyncpa [#allocation5], 0  ;;  %s1741_s24 = smov [#allocation7]  }
   0x4   :  { %s33_s25 = sshll.u32 %s1741_s24, 4  ;;  %s34_s25 = int_to_ptr.vmem [resolvable:$true] %s33_s25 }
   0x5   :  { %s1649_s26 = scalar_lea.vmem %s34_s25, 128  ;;  %p1654_p1 = scmp.lt.s32.totalorder %s34_s25, %s34_s25 }
   0x6   :  { %p1650_p0 = scmp.ne.s32.totalorder %s34_s25, %s1649_s26  ;;  %p1655_p2 = scmp.lt.s32.totalorder %s1649_s26, %s1649_s26 }
   0x8   :  { %p1656_p3 = por %p1655_p2, %p1654_p1 }
   0xa   :  { %p1657_p4 = pnand %p1656_p3, %p1650_p0 }
   0xc   :  { %1660 = shalt.err (!%p1657_p4)
}
   0xd   :  { %s1742_s27 = smov 64   ;;  %s1743_s28 = smov 4  }
   0xe   :  { %39 = dma.hbm_to_vmem [thread:$0]  %s2345_s1, 128, %s34_s25, [#allocation8], %s1742_s27, %s1742_s27, %s1743_s28  }
   0xf   :  { %s1744_s8 = smov [#allocation3]  }
  0x10   :  { %s21_s9 = sshll.u32 %s1744_s8, 4  ;;  %s22_s9 = int_to_ptr.vmem [resolvable:$true] %s21_s9 }
  0x11   :  { %s1669_s10 = scalar_lea.vmem %s22_s9, 1024  ;;  %p1674_p6 = scmp.lt.s32.totalorder %s22_s9, %s22_s9 }
  0x12   :  { %p1670_p5 = scmp.ne.s32.totalorder %s22_s9, %s1669_s10  ;;  %p1675_p7 = scmp.lt.s32.totalorder %s1669_s10, %s1669_s10 }
  0x14   :  { %p1676_p8 = por %p1675_p7, %p1674_p6 }
  0x16   :  { %p1677_p9 = pnand %p1676_p8, %p1670_p5 }
  0x18   :  { %1680 = shalt.err (!%p1677_p9)
}
  0x19   :  { %s1745_s11 = smov 512   ;;  %s1746_s12 = smov 32  }
  0x1a   :  { %27 = dma.hbm_to_vmem [thread:$0]  %s2344_s0, 1024, %s22_s9, [#allocation4], %s1745_s11, %s1745_s11, %s1746_s12  }
  0x1b   :  { %s62_s16 = sshll.u32 %s2350_s6, 4  ;;  %s1747_s17 = smov [#allocation9]   ;;  %s63_s16 = int_to_ptr.vmem [resolvable:$true] %s62_s16 }
  0x1c   :  { %s52_s18 = sshll.u32 %s1747_s17, 4  ;;  %s53_s18 = int_to_ptr.vmem [resolvable:$true] %s52_s18 }
  0x1d   :  { %s1689_s19 = scalar_lea.vmem %s53_s18, 512  ;;  %p1694_p11 = scmp.lt.s32.totalorder %s53_s18, %s53_s18 }
  0x1e   :  { %p1690_p10 = scmp.ne.s32.totalorder %s53_s18, %s1689_s19  ;;  %p1695_p12 = scmp.lt.s32.totalorder %s1689_s19, %s1689_s19 }
  0x20   :  { %p1696_p13 = por %p1695_p12, %p1694_p11 }
  0x22   :  { %p1697_p0 = pnand %p1696_p13, %p1690_p10 }
  0x24   :  { %1700 = shalt.err (!%p1697_p0)
}
  0x25   :  { %55 = dma.hbm_to_vmem [thread:$0]  %s2349_s5, 512, %s53_s18, [#allocation8]  }
  0x26   :  { %s1701_s0 = scalar_lea.vmem %s63_s16, 16  ;;  %p1706_p2 = scmp.lt.s32.totalorder %s63_s16, %s63_s16 }
  0x27   :  { %p1702_p1 = scmp.ne.s32.totalorder %s63_s16, %s1701_s0  ;;  %p1707_p3 = scmp.lt.s32.totalorder %s1701_s0, %s1701_s0 }
  0x29   :  { %p1708_p4 = por %p1707_p3, %p1706_p2 }
  0x2b   :  { %p1709_p5 = pnand %p1708_p4, %p1702_p1 }
  0x2d   :  { %1712 = shalt.err (!%p1709_p5)
}
  0x2e   :  { %s1748_s6 = smov [#allocation10]  }
  0x2f   :  { %65 = dma.vmem_to_smem %s63_s16, 16, %s1748_s6, [#allocation6]  }
  0x30   :  { %1733 = dma.done.wait [#allocation4], 1024  }
  0x31   :  { %1734 = vsyncadd [#allocation4], 4294966272 }
  0x32   :  { %1735 = dma.done.wait [#allocation8], 640  }
  0x33   :  { %1736 = vsyncadd [#allocation8], 4294966656 }
  0x34   :  { %1737 = dma.done.wait [#allocation6], 16  }
  0x35   :  { %1738 = vsyncadd [#allocation6], 4294967280 }
  0x36   :  { %78 = sfence }
  0x37   :  { %v85_v0 = vld [vmem:[#allocation3 + $0x8] sm:$0xff]  ;;  %v87_v2 = vld [vmem:[#allocation3 + $0x18] sm:$0xff]  ;;  %v84_v5 = vld [vmem:[#allocation3] sm:$0xff]  ;;  %v2352_v7 = vmov 0   ;;  %vm111_vm0 = vcmask 130048   ;;  %s209_s25 = sld [smem:[#allocation10]] }
  0x38   :  { %v89_v1 = vld [vmem:[#allocation3 + $0x28] sm:$0xff]  ;;  %v91_v4 = vld [vmem:[#allocation3 + $0x38] sm:$0xff]  ;;  %v88_v6 = vld [vmem:[#allocation3 + $0x20] sm:$0xff]  ;;  %147 = vmatprep.mubr.bf16.mxu0 %v2352_v7  ;;  %190 = vmatprep.mubr.bf16.mxu1 %v2352_v7  ;;  %s1751_s26 = smov 113   ;;  %s1752_s27 = smov 127   ;;  %v1758_v60 = vmov 1  }
  0x39   :  { %v93_v3 = vpack.c.bf16 %v89_v1, %v85_v0  ;;  %v95_v8 = vpack.c.bf16 %v91_v4, %v87_v2  ;;  %v92_v9 = vpack.c.bf16 %v88_v6, %v84_v5  ;;  %v86_v10 = vld [vmem:[#allocation3 + $0x10] sm:$0xff]  ;;  %1631 = vset.pattern.permute.xlu0 %v2352_v7  ;;  %v1636_v13 = vld [vmem:[#allocation7] sm:$0xff]   ;;  %v1828_v15 = vld [vmem:[%s2348_s4 + $0x8] sm:$0xff]  ;;  %s1753_s28 = smov 1   ;;  %s1754_s29 = smov 15   ;;  %1633 = vset.pattern.permute.xlu1 %v1758_v60 }
  0x3a   :  { %v90_v11 = vld [vmem:[#allocation3 + $0x30] sm:$0xff]  ;;  %v1822_v14 = vld [vmem:[%s2348_s4] sm:$0xff]  ;;  %2359 = vst [vmem:[#allocation17_spill] sm:$0xff] %v1828_v15  ;;  %s1750_s4 = smov 112   ;;  %s1755_s30 = smov 16  }
  0x3b   :  { %129 = vmatprep.subr.bf16.mxu0 %v93_v3  ;;  %v94_v12 = vpack.c.bf16 %v90_v11, %v86_v10  ;;  %2358 = vst [vmem:[#allocation16_spill] sm:$0xff] %v1822_v14  ;;  %172 = vmatprep.subr.bf16.mxu1 %v95_v8  ;;  %s1756_s8 = smov 17   ;;  %s1757_s9 = smov 111   ;;  %v1637_v56 = vld [vmem:[%s2346_s2 + $0x4] ss:$8 sps:$4 sm:$0xff]  }
  0x3c   :  { %130 = vmatpush1.bf16.msra.mxu0 %v92_v9  ;;  %98 = vperm.xlu0 %1631, %v1822_v14   ;;  %s1534_s15 = sld [smem:[#allocation10 + $0x1]] }
  0x3d   :  { %173 = vmatpush1.bf16.msra.mxu1 %v94_v12  ;;  %v1835_v18 = vstv %s209_s25  ;;  %s1538_s17 = sld [smem:[#allocation10 + $0x2]] }
  0x3f   :  { %1456 = vmatmul.mubr.msk.bf16.vlgmr.msra.gmra.mxu0 %vm111_vm0, %v1636_v13 }
  0x40   :  { %1457 = vmatmul.mubr.msk.bf16.vlgmr.msra.gmra.mxu1 %vm111_vm0, %v1636_v13  ;;  %103 = vperm.xlu0 %1631, %v1828_v15  }
  0x41   :  { %1532 = vmatprep.mubr.msk.bf16.mxu0 %vm111_vm0, %v1637_v56  ;;  %1533 = vmatprep.mubr.msk.bf16.mxu1 %vm111_vm0, %v1637_v56 }
  0x44   :  { %1632 = vset.pattern.permute.xlu0 %v1758_v60 }
  0xb7   :  { %v1833_v16 = vpop.permute.xlu0 %98 }
  0xbb   :  { %v1841_v26 = vpop.permute.xlu0 %103 }
  0xff   :  { %v149_v17 = vpop.f32.mrf.mxu0 }
 0x100   :  { %v150_v19 = vadd.f32 %v149_v17, %v1833_v16  ;;  %v192_v20 = vpop.f32.mrf.mxu1 }
 0x101   :  { %v193_v21 = vadd.f32 %v192_v20, %v1833_v16  ;;  %v151_v22 = vpop.f32.mrf.mxu0 }
 0x102   :  { %vm201_vm1 = vcmp.gt.f32.partialorder %v150_v19, 0.0  ;;  %v211_v23 = vmul.f32 %v1835_v18, %v150_v19  ;;  %v194_v24 = vpop.f32.mrf.mxu1  ;;  %v152_v39 = vadd.f32 %v151_v22, %v1833_v16  ;;  %v243_v22 = vlaneseq }
 0x103   :  { %vm203_vm2 = vcmp.gt.f32.partialorder %v193_v21, 0.0  ;;  %v213_v25 = vmul.f32 %v1835_v18, %v193_v21  ;;  %v153_v27 = vpop.f32.mrf.mxu0  ;;  %v195_v41 = vadd.f32 %v194_v24, %v1833_v16 }
 0x104   :  { %v1843_v28 = vsel %vm201_vm1, %v150_v19, %v211_v23  ;;  %v154_v29 = vadd.f32 %v153_v27, %v1841_v26  ;;  %v196_v30 = vpop.f32.mrf.mxu1  ;;  %v212_v40 = vmul.f32 %v1835_v18, %v152_v39  ;;  %vm202_vm5 = vcmp.gt.f32.partialorder %v152_v39, 0.0 }
 0x105   :  { %v1846_v31 = vsel %vm203_vm2, %v193_v21, %v213_v25  ;;  %v197_v32 = vadd.f32 %v196_v30, %v1841_v26  ;;  %760 = vrot.lane.b32.xlu1 %v1843_v28, %s1750_s4  ;;  %v155_v42 = vpop.f32.mrf.mxu0  ;;  %v214_v45 = vmul.f32 %v1835_v18, %v195_v41  ;;  %vm204_vm6 = vcmp.gt.f32.partialorder %v195_v41, 0.0 }
 0x106   :  { %vm205_vm3 = vcmp.gt.f32.partialorder %v154_v29, 0.0  ;;  %v215_v33 = vmul.f32 %v1835_v18, %v154_v29  ;;  %768 = vrot.lane.b32.xlu0 %v1846_v31, %s1750_s4  ;;  %v156_v43 = vadd.f32 %v155_v42, %v1841_v26  ;;  %v1923_v44 = vsel %vm202_vm5, %v152_v39, %v212_v40  ;;  %v198_v46 = vpop.f32.mrf.mxu1 }
 0x107   :  { %vm207_vm4 = vcmp.gt.f32.partialorder %v197_v32, 0.0  ;;  %v217_v34 = vmul.f32 %v1835_v18, %v197_v32  ;;  %v199_v48 = vadd.f32 %v198_v46, %v1841_v26  ;;  %v1932_v49 = vsel %vm204_vm6, %v195_v41, %v214_v45 }
 0x108   :  { %v1855_v35 = vsel %vm205_vm3, %v154_v29, %v215_v33  ;;  %v216_v47 = vmul.f32 %v1835_v18, %v156_v43  ;;  %vm206_vm7 = vcmp.gt.f32.partialorder %v156_v43, 0.0  ;;  %v257_v25 = vshrl.u32 %v243_v22, 7  ;;  %v786_v33 = vld [vmem:[#allocation9 + $0x6] ss:$8 sm:$0xf] }
 0x109   :  { %v1857_v36 = vsel %vm207_vm4, %v197_v32, %v217_v34  ;;  %762 = vrot.lane.b32.xlu1 %v1855_v35, %s1750_s4  ;;  %v218_v51 = vmul.f32 %v1835_v18, %v199_v48  ;;  %vm208_vm8 = vcmp.gt.f32.partialorder %v199_v48, 0.0  ;;  %v2070_v26 = vand.u32 127, %v243_v22 }
 0x10a   :  { %676 = vrot.lane.b32.xlu0 %v1843_v28, %s1751_s26  ;;  %v1938_v50 = vsel %vm206_vm7, %v156_v43, %v216_v47  ;;  %v2074_v29 = vsub.s32 0, %v257_v25  ;;  %v2076_v32 = vsub.s32 1, %v257_v25  ;;  %v2081_v39 = vsub.s32 2, %v257_v25 }
 0x10b   :  { %v1945_v52 = vsel %vm208_vm8, %v199_v48, %v218_v51  ;;  %vm776_vm9 = vcmp.lt.s32.totalorder %v2070_v26, 112  ;;  %v2084_v41 = vsub.s32 3, %v257_v25  ;;  %v702_v25 = vld [vmem:[#allocation9 + $0x5] ss:$8 sm:$0xf]  ;;  %vm692_vm10 = vcmp.lt.s32.totalorder %v2070_v26, 113 }
 0x10c   :  { %v791_v40 = vrot.slane %v786_v33, %v2074_v29  ;;  %v795_v43 = vrot.slane %v786_v33, %v2076_v32  ;;  %v799_v47 = vrot.slane %v786_v33, %v2081_v39  ;;  %vm608_vm11 = vcmp.lt.s32.totalorder %v2070_v26, 127 }
 0x10d   :  { %770 = vrot.lane.b32.xlu1 %v1857_v36, %s1750_s4  ;;  %v803_v56 = vrot.slane %v786_v33, %v2084_v41  ;;  %vm496_vm12 = vcmp.lt.s32.totalorder %v2070_v26, 1  ;;  %vm412_vm13 = vcmp.lt.s32.totalorder %v2070_v26, 15  ;;  %vm328_vm14 = vcmp.lt.s32.totalorder %v2070_v26, 16 }
 0x10e   :  { %684 = vrot.lane.b32.xlu0 %v1846_v31, %s1751_s26  ;;  %vm245_vm15 = vcmp.lt.s32.totalorder %v2070_v26, 17  ;;  %vm860_vm1 = vcmp.lt.s32.totalorder %v2070_v26, 111  ;;  %v1759_v26 = vmov 2  }
 0x111   :  { %678 = vrot.lane.b32.xlu1 %v1855_v35, %s1751_s26 }
 0x112   :  { %592 = vrot.lane.b32.xlu0 %v1843_v28, %s1752_s27 }
 0x115   :  { %686 = vrot.lane.b32.xlu1 %v1857_v36, %s1751_s26 }
 0x116   :  { %600 = vrot.lane.b32.xlu0 %v1846_v31, %s1752_s27 }
 0x119   :  { %594 = vrot.lane.b32.xlu1 %v1855_v35, %s1752_s27 }
 0x11a   :  { %480 = vrot.lane.b32.xlu0 %v1843_v28, %s1753_s28 }
 0x11d   :  { %602 = vrot.lane.b32.xlu1 %v1857_v36, %s1752_s27 }
 0x11e   :  { %488 = vrot.lane.b32.xlu0 %v1846_v31, %s1753_s28 }
 0x121   :  { %482 = vrot.lane.b32.xlu1 %v1855_v35, %s1753_s28 }
 0x122   :  { %396 = vrot.lane.b32.xlu0 %v1843_v28, %s1754_s29 }
 0x125   :  { %490 = vrot.lane.b32.xlu1 %v1857_v36, %s1753_s28 }
 0x126   :  { %404 = vrot.lane.b32.xlu0 %v1846_v31, %s1754_s29 }
 0x129   :  { %398 = vrot.lane.b32.xlu1 %v1855_v35, %s1754_s29 }
 0x12a   :  { %312 = vrot.lane.b32.xlu0 %v1843_v28, %s1755_s30 }
 0x12d   :  { %406 = vrot.lane.b32.xlu1 %v1857_v36, %s1754_s29 }
 0x12e   :  { %320 = vrot.lane.b32.xlu0 %v1846_v31, %s1755_s30 }
 0x131   :  { %314 = vrot.lane.b32.xlu1 %v1855_v35, %s1755_s30 }
 0x132   :  { %227 = vrot.lane.b32.xlu0 %v1843_v28, %s1756_s8 }
 0x135   :  { %322 = vrot.lane.b32.xlu1 %v1857_v36, %s1755_s30 }
 0x136   :  { %235 = vrot.lane.b32.xlu0 %v1846_v31, %s1756_s8 }
 0x139   :  { %229 = vrot.lane.b32.xlu1 %v1855_v35, %s1756_s8 }
 0x13a   :  { %844 = vrot.lane.b32.xlu0 %v1843_v28, %s1757_s9 }
 0x13d   :  { %237 = vrot.lane.b32.xlu1 %v1857_v36, %s1756_s8 }
 0x13e   :  { %852 = vrot.lane.b32.xlu0 %v1846_v31, %s1757_s9 }
 0x141   :  { %846 = vrot.lane.b32.xlu1 %v1855_v35, %s1757_s9 }
 0x142   :  { %764 = vrot.lane.b32.xlu0 %v1923_v44, %s1750_s4 }
 0x145   :  { %854 = vrot.lane.b32.xlu1 %v1857_v36, %s1757_s9 }
 0x146   :  { %772 = vrot.lane.b32.xlu0 %v1932_v49, %s1750_s4 }
 0x149   :  { %766 = vrot.lane.b32.xlu1 %v1938_v50, %s1750_s4 }
 0x14a   :  { %680 = vrot.lane.b32.xlu0 %v1923_v44, %s1751_s26 }
 0x14d   :  { %774 = vrot.lane.b32.xlu1 %v1945_v52, %s1750_s4 }
 0x14e   :  { %688 = vrot.lane.b32.xlu0 %v1932_v49, %s1751_s26 }
 0x151   :  { %682 = vrot.lane.b32.xlu1 %v1938_v50, %s1751_s26 }
 0x152   :  { %596 = vrot.lane.b32.xlu0 %v1923_v44, %s1752_s27 }
 0x155   :  { %690 = vrot.lane.b32.xlu1 %v1945_v52, %s1751_s26 }
 0x156   :  { %604 = vrot.lane.b32.xlu0 %v1932_v49, %s1752_s27 }
 0x159   :  { %598 = vrot.lane.b32.xlu1 %v1938_v50, %s1752_s27 }
 0x15a   :  { %484 = vrot.lane.b32.xlu0 %v1923_v44, %s1753_s28 }
 0x15d   :  { %606 = vrot.lane.b32.xlu1 %v1945_v52, %s1752_s27 }
 0x15e   :  { %492 = vrot.lane.b32.xlu0 %v1932_v49, %s1753_s28 }
 0x161   :  { %486 = vrot.lane.b32.xlu1 %v1938_v50, %s1753_s28 }
 0x162   :  { %400 = vrot.lane.b32.xlu0 %v1923_v44, %s1754_s29 }
 0x165   :  { %494 = vrot.lane.b32.xlu1 %v1945_v52, %s1753_s28 }
 0x166   :  { %408 = vrot.lane.b32.xlu0 %v1932_v49, %s1754_s29 }
 0x169   :  { %402 = vrot.lane.b32.xlu1 %v1938_v50, %s1754_s29 }
 0x16a   :  { %316 = vrot.lane.b32.xlu0 %v1923_v44, %s1755_s30 }
 0x16d   :  { %410 = vrot.lane.b32.xlu1 %v1945_v52, %s1754_s29 }
 0x16e   :  { %324 = vrot.lane.b32.xlu0 %v1932_v49, %s1755_s30 }
 0x171   :  { %318 = vrot.lane.b32.xlu1 %v1938_v50, %s1755_s30 }
 0x172   :  { %231 = vrot.lane.b32.xlu0 %v1923_v44, %s1756_s8 }
 0x175   :  { %326 = vrot.lane.b32.xlu1 %v1945_v52, %s1755_s30 }
 0x176   :  { %239 = vrot.lane.b32.xlu0 %v1932_v49, %s1756_s8 }
 0x177   :  { %v1991_v53 = vpop.permute.xlu1 %760 }
 0x178   :  { %v1993_v54 = vpop.permute.xlu0 %768 }
 0x179   :  { %233 = vrot.lane.b32.xlu1 %v1938_v50, %s1756_s8 }
 0x17a   :  { %848 = vrot.lane.b32.xlu0 %v1923_v44, %s1757_s9 }
 0x17b   :  { %v1999_v55 = vpop.permute.xlu1 %762 }
 0x17c   :  { %v2004_v57 = vpop.permute.xlu0 %676 }
 0x17d   :  { %241 = vrot.lane.b32.xlu1 %v1945_v52, %s1756_s8 }
 0x17e   :  { %856 = vrot.lane.b32.xlu0 %v1932_v49, %s1757_s9 }
 0x17f   :  { %v2012_v58 = vpop.permute.xlu1 %770 }
 0x180   :  { %v2014_v59 = vpop.permute.xlu0 %684 }
 0x181   :  { %850 = vrot.lane.b32.xlu1 %v1938_v50, %s1757_s9 }
 0x182   :  { %967 = vperm.xlu0 %1632, %v1822_v14  }
 0x183   :  { %v2018_v61 = vpop.permute.xlu1 %678 }
 0x184   :  { %v2021_v62 = vpop.permute.xlu0 %592 }
 0x185   :  { %858 = vrot.lane.b32.xlu1 %v1945_v52, %s1757_s9 }
 0x186   :  { %1635 = vset.pattern.permute.xlu0 %v1759_v26 }
 0x187   :  { %v2025_v63 = vpop.permute.xlu1 %686 }
 0x188   :  { %v2027_v0 = vpop.permute.xlu0 %600 }
 0x189   :  { %971 = vperm.xlu1 %1633, %v1828_v15   ;;  %v707_v15 = vrot.slane %v702_v25, %v2074_v29 }
 0x18b   :  { %v2030_v1 = vpop.permute.xlu1 %594 }
 0x18c   :  { %v2032_v2 = vpop.permute.xlu0 %480 }
 0x18d   :  { %1634 = vset.pattern.permute.xlu1 %v1759_v26 }
 0x18f   :  { %v2034_v3 = vpop.permute.xlu1 %602 }
 0x190   :  { %v2036_v4 = vpop.permute.xlu0 %488 }
 0x193   :  { %v2038_v5 = vpop.permute.xlu1 %482 }
 0x194   :  { %v2040_v6 = vpop.permute.xlu0 %396 }
 0x197   :  { %v2042_v8 = vpop.permute.xlu1 %490 }
 0x198   :  { %v2044_v9 = vpop.permute.xlu0 %404 }
 0x19b   :  { %v2046_v10 = vpop.permute.xlu1 %398 }
 0x19c   :  { %v2048_v11 = vpop.permute.xlu0 %312 }
 0x19f   :  { %v2050_v12 = vpop.permute.xlu1 %406 }
 0x1a0   :  { %v2052_v13 = vpop.permute.xlu0 %320 }
 0x1a3   :  { %v2054_v16 = vpop.permute.xlu1 %314 }
 0x1a4   :  { %v2056_v17 = vpop.permute.xlu0 %227 }
 0x1a7   :  { %v2058_v18 = vpop.permute.xlu1 %322 }
 0x1a8   :  { %v2060_v19 = vpop.permute.xlu0 %235 }
 0x1ab   :  { %v2062_v20 = vpop.permute.xlu1 %229 }
 0x1ac   :  { %v2064_v21 = vpop.permute.xlu0 %844 }
 0x1af   :  { %v2066_v23 = vpop.permute.xlu1 %237 }
 0x1b0   :  { %v2068_v24 = vpop.permute.xlu0 %852 }
 0x1b3   :  { %v2072_v27 = vpop.permute.xlu1 %846 }
 0x1b4   :  { %2360 = vst [vmem:[#allocation18_spill] sm:$0xff] %v2072_v27  ;;  %v765_v30 = vpop.permute.xlu0 %764 }
 0x1b5   :  { %v781_v45 = vsel %vm776_vm9, %v1991_v53, %v765_v30  ;;  %v779_v46 = vsel %vm776_vm9, %v765_v30, %v1993_v54 }
 0x1b6   :  { %v808_v51 = vmul.f32 %v791_v40, %v781_v45  ;;  %v809_v38 = vmul.f32 %v795_v43, %v779_v46  ;;  %v711_v46 = vrot.slane %v702_v25, %v2076_v32 }
 0x1b7   :  { %v2079_v34 = vpop.permute.xlu1 %854 }
 0x1b8   :  { %2361 = vst [vmem:[#allocation19_spill] sm:$0xff] %v2079_v34  ;;  %v773_v42 = vpop.permute.xlu0 %772 }
 0x1b9   :  { %v777_v30 = vsel %vm776_vm9, %v1993_v54, %v773_v42  ;;  %v783_v33 = vsel %vm776_vm9, %v773_v42, %v1991_v53 }
 0x1ba   :  { %v810_v34 = vmul.f32 %v799_v47, %v777_v30  ;;  %v811_v53 = vmul.f32 %v803_v56, %v783_v33 }
 0x1bb   :  { %v767_v48 = vpop.permute.xlu1 %766 }
 0x1bc   :  { %v780_v60 = vsel %vm776_vm9, %v767_v48, %v2012_v58  ;;  %v782_v22 = vsel %vm776_vm9, %v1999_v55, %v767_v48  ;;  %v681_v7 = vpop.permute.xlu0 %680 }
 0x1bd   :  { %v812_v37 = vmul.f32 %v791_v40, %v782_v22  ;;  %v813_v14 = vmul.f32 %v795_v43, %v780_v60 }
 0x1bf   :  { %v1603_v45 = vpack.c.bf16 %v812_v37, %v808_v51  ;;  %v775_v27 = vpop.permute.xlu1 %774  ;;  %v1604_v48 = vpack.c.bf16 %v813_v14, %v809_v38  ;;  %v697_v37 = vsel %vm692_vm10, %v2004_v57, %v681_v7  ;;  %v695_v14 = vsel %vm692_vm10, %v681_v7, %v2014_v59 }
 0x1c0   :  { %v778_v54 = vsel %vm776_vm9, %v2012_v58, %v775_v27  ;;  %v784_v40 = vsel %vm776_vm9, %v775_v27, %v1999_v55  ;;  %v689_v43 = vpop.permute.xlu0 %688  ;;  %v715_v58 = vrot.slane %v702_v25, %v2081_v39  ;;  %v724_v55 = vmul.f32 %v707_v15, %v697_v37 }
 0x1c1   :  { %v814_v42 = vmul.f32 %v799_v47, %v778_v54  ;;  %v815_v51 = vmul.f32 %v803_v56, %v784_v40  ;;  %1166 = vmatprep.subr.bf16.mxu0 %v1604_v48  ;;  %v719_v27 = vrot.slane %v702_v25, %v2084_v41  ;;  %v618_v56 = vld [vmem:[#allocation9 + $0x4] ss:$8 sm:$0xf]  ;;  %v725_v7 = vmul.f32 %v711_v46, %v695_v14 }
 0x1c2   :  { %1167 = vmatpush1.bf16.msra.mxu0 %v1603_v45  ;;  %v699_v25 = vsel %vm692_vm10, %v689_v43, %v2004_v57  ;;  %v623_v40 = vrot.slane %v618_v56, %v2074_v29 }
 0x1c3   :  { %v1605_v38 = vpack.c.bf16 %v814_v42, %v810_v34  ;;  %v683_v60 = vpop.permute.xlu1 %682  ;;  %v1606_v22 = vpack.c.bf16 %v815_v51, %v811_v53  ;;  %v693_v34 = vsel %vm692_vm10, %v2014_v59, %v689_v43  ;;  %v627_v51 = vrot.slane %v618_v56, %v2076_v32 }
 0x1c4   :  { %v696_v30 = vsel %vm692_vm10, %v683_v60, %v2025_v63  ;;  %v698_v47 = vsel %vm692_vm10, %v2018_v61, %v683_v60  ;;  %v597_v33 = vpop.permute.xlu0 %596  ;;  %v726_v42 = vmul.f32 %v715_v58, %v693_v34 }
 0x1c5   :  { %v728_v45 = vmul.f32 %v707_v15, %v698_v47  ;;  %v729_v48 = vmul.f32 %v711_v46, %v696_v30  ;;  %1209 = vmatprep.subr.bf16.mxu1 %v1606_v22  ;;  %v727_v46 = vmul.f32 %v719_v27, %v699_v25  ;;  %v613_v43 = vsel %vm608_vm11, %v2021_v62, %v597_v33 }
 0x1c6   :  { %1210 = vmatpush1.bf16.msra.mxu1 %v1605_v38  ;;  %v611_v60 = vsel %vm608_vm11, %v597_v33, %v2027_v0  ;;  %v635_v47 = vrot.slane %v618_v56, %v2084_v41 }
 0x1c7   :  { %v1599_v54 = vpack.c.bf16 %v728_v45, %v724_v55  ;;  %v691_v53 = vpop.permute.xlu1 %690  ;;  %v1600_v37 = vpack.c.bf16 %v729_v48, %v725_v7  ;;  %v641_v33 = vmul.f32 %v627_v51, %v611_v60  ;;  %v1594_v60 = vpack.c.bf16 %v1945_v52, %v1932_v49 }
 0x1c8   :  { %v694_v15 = vsel %vm692_vm10, %v2025_v63, %v691_v53  ;;  %v700_v59 = vsel %vm692_vm10, %v691_v53, %v2018_v61  ;;  %v605_v57 = vpop.permute.xlu0 %604  ;;  %v631_v63 = vrot.slane %v618_v56, %v2081_v39  ;;  %v640_v61 = vmul.f32 %v623_v40, %v613_v43 }
 0x1c9   :  { %v730_v14 = vmul.f32 %v715_v58, %v694_v15  ;;  %v731_v38 = vmul.f32 %v719_v27, %v700_v59  ;;  %1168 = vmatprep.subr.bf16.mxu0 %v1600_v37  ;;  %v506_v27 = vld [vmem:[#allocation9 + $0x3] ss:$8 sm:$0xf]  ;;  %v609_v45 = vsel %vm608_vm11, %v2027_v0, %v605_v57  ;;  %v615_v56 = vsel %vm608_vm11, %v605_v57, %v2021_v62 }
 0x1ca   :  { %1169 = vmatpush1.bf16.msra.mxu0 %v1599_v54  ;;  %v515_v53 = vrot.slane %v506_v27, %v2076_v32  ;;  %v1592_v15 = vpack.c.bf16 %v1938_v50, %v1923_v44  ;;  %v642_v59 = vmul.f32 %v631_v63, %v609_v45  ;;  %v519_v0 = vrot.slane %v506_v27, %v2081_v39 }
 0x1cb   :  { %v1601_v22 = vpack.c.bf16 %v730_v14, %v726_v42  ;;  %v599_v55 = vpop.permute.xlu1 %598  ;;  %v1602_v30 = vpack.c.bf16 %v731_v38, %v727_v46  ;;  %v643_v57 = vmul.f32 %v635_v47, %v615_v56 }
 0x1cc   :  { %v612_v7 = vsel %vm608_vm11, %v599_v55, %v2034_v3  ;;  %v614_v58 = vsel %vm608_vm11, %v2030_v1, %v599_v55  ;;  %v485_v34 = vpop.permute.xlu0 %484  ;;  %v523_v55 = vrot.slane %v506_v27, %v2084_v41 }
 0x1cd   :  { %v644_v48 = vmul.f32 %v623_v40, %v614_v58  ;;  %v645_v25 = vmul.f32 %v627_v51, %v612_v7  ;;  %1211 = vmatprep.subr.bf16.mxu1 %v1602_v30  ;;  %v501_v46 = vsel %vm496_vm12, %v2032_v2, %v485_v34  ;;  %v499_v44 = vsel %vm496_vm12, %v485_v34, %v2036_v4 }
 0x1ce   :  { %1212 = vmatpush1.bf16.msra.mxu1 %v1601_v22  ;;  %v529_v22 = vmul.f32 %v515_v53, %v501_v46  ;;  %v530_v7 = vmul.f32 %v519_v0, %v499_v44 }
 0x1cf   :  { %v1595_v54 = vpack.c.bf16 %v644_v48, %v640_v61  ;;  %v607_v37 = vpop.permute.xlu1 %606  ;;  %v1596_v42 = vpack.c.bf16 %v645_v25, %v641_v33  ;;  %v422_v61 = vld [vmem:[#allocation9 + $0x2] ss:$8 sm:$0xf] }
 0x1d0   :  { %v610_v40 = vsel %vm608_vm11, %v2034_v3, %v607_v37  ;;  %v616_v62 = vsel %vm608_vm11, %v607_v37, %v2030_v1  ;;  %v493_v51 = vpop.permute.xlu0 %492  ;;  %v511_v3 = vrot.slane %v506_v27, %v2074_v29  ;;  %v2362_v27 = vpack.c.bf16 %v1855_v35, %v1843_v28 }
 0x1d1   :  { %v646_v43 = vmul.f32 %v631_v63, %v610_v40  ;;  %v647_v14 = vmul.f32 %v635_v47, %v616_v62  ;;  %1170 = vmatprep.subr.bf16.mxu0 %v1596_v42  ;;  %v503_v58 = vsel %vm496_vm12, %v493_v51, %v2032_v2  ;;  %v497_v52 = vsel %vm496_vm12, %v2036_v4, %v493_v51 }
 0x1d2   :  { %1171 = vmatpush1.bf16.msra.mxu0 %v1595_v54  ;;  %v431_v45 = vrot.slane %v422_v61, %v2076_v32  ;;  %v528_v25 = vmul.f32 %v511_v3, %v503_v58  ;;  %v435_v56 = vrot.slane %v422_v61, %v2081_v39  ;;  %v531_v35 = vmul.f32 %v523_v55, %v497_v52 }
 0x1d3   :  { %v1597_v50 = vpack.c.bf16 %v646_v43, %v642_v59  ;;  %v487_v38 = vpop.permute.xlu1 %486  ;;  %1172 = vmatprep.subr.bf16.mxu0 %v1592_v15  ;;  %v1598_v1 = vpack.c.bf16 %v647_v14, %v643_v57  ;;  %v439_v51 = vrot.slane %v422_v61, %v2084_v41  ;;  %v338_v43 = vld [vmem:[#allocation9 + $0x1] ss:$8 sm:$0xf] }
 0x1d4   :  { %v500_v63 = vsel %vm496_vm12, %v487_v38, %v2042_v8  ;;  %v502_v30 = vsel %vm496_vm12, %v2038_v5, %v487_v38  ;;  %v401_v47 = vpop.permute.xlu0 %400 }
 0x1d5   :  { %v533_v34 = vmul.f32 %v515_v53, %v502_v30  ;;  %v534_v49 = vmul.f32 %v519_v0, %v500_v63  ;;  %1213 = vmatprep.subr.bf16.mxu1 %v1598_v1  ;;  %v417_v53 = vsel %vm412_vm13, %v2040_v6, %v401_v47  ;;  %v415_v15 = vsel %vm412_vm13, %v401_v47, %v2044_v9 }
 0x1d6   :  { %1173 = vmatpush1.bf16.msra.mxu0 %v2362_v27  ;;  %1214 = vmatpush1.bf16.msra.mxu1 %v1597_v50  ;;  %v445_v62 = vmul.f32 %v431_v45, %v417_v53  ;;  %v347_v1 = vrot.slane %v338_v43, %v2076_v32  ;;  %v351_v63 = vrot.slane %v338_v43, %v2081_v39 }
 0x1d7   :  { %v1589_v33 = vpack.c.bf16 %v534_v49, %v530_v7  ;;  %v495_v48 = vpop.permute.xlu1 %494  ;;  %1215 = vmatprep.subr.bf16.mxu1 %v1594_v60  ;;  %v1588_v2 = vpack.c.bf16 %v533_v34, %v529_v22 }
 0x1d8   :  { %v498_v4 = vsel %vm496_vm12, %v2042_v8, %v495_v48  ;;  %v504_v54 = vsel %vm496_vm12, %v495_v48, %v2038_v5  ;;  %v409_v28 = vpop.permute.xlu0 %408  ;;  %v2363_v8 = vpack.c.bf16 %v1857_v36, %v1846_v31  ;;  %v427_v5 = vrot.slane %v422_v61, %v2074_v29 }
 0x1d9   :  { %v532_v37 = vmul.f32 %v511_v3, %v504_v54  ;;  %v535_v42 = vmul.f32 %v523_v55, %v498_v4  ;;  %1174 = vmatprep.subr.bf16.mxu0 %v1588_v2  ;;  %v446_v31 = vmul.f32 %v435_v56, %v415_v15  ;;  %v419_v36 = vsel %vm412_vm13, %v409_v28, %v2040_v6  ;;  %v254_v2 = vld [vmem:[#allocation9] ss:$8 sm:$0xf] }
 0x1da   :  { %1216 = vmatpush1.bf16.msra.mxu1 %v2363_v8  ;;  %v413_v3 = vsel %vm412_vm13, %v2044_v9, %v409_v28  ;;  %v444_v55 = vmul.f32 %v427_v5, %v419_v36 }
 0x1db   :  { %v1587_v59 = vpack.c.bf16 %v532_v37, %v528_v25  ;;  %v403_v0 = vpop.permute.xlu1 %402  ;;  %v1590_v40 = vpack.c.bf16 %v535_v42, %v531_v35  ;;  %v447_v61 = vmul.f32 %v439_v51, %v413_v3  ;;  %v263_v37 = vrot.slane %v254_v2, %v2076_v32 }
 0x1dc   :  { %v416_v57 = vsel %vm412_vm13, %v403_v0, %v2050_v12  ;;  %v418_v46 = vsel %vm412_vm13, %v2046_v10, %v403_v0  ;;  %v317_v14 = vpop.permute.xlu0 %316 }
 0x1dd   :  { %v449_v44 = vmul.f32 %v431_v45, %v418_v46  ;;  %v450_v50 = vmul.f32 %v435_v56, %v416_v57  ;;  %1175 = vmatpush1.bf16.msra.mxu0 %v1587_v59  ;;  %1217 = vmatprep.subr.bf16.mxu1 %v1590_v40  ;;  %v333_v47 = vsel %vm328_vm14, %v2048_v11, %v317_v14 }
 0x1de   :  { %1218 = vmatpush1.bf16.msra.mxu1 %v1589_v33  ;;  %v331_v34 = vsel %vm328_vm14, %v317_v14, %v2052_v13  ;;  %v361_v33 = vmul.f32 %v347_v1, %v333_v47  ;;  %v267_v59 = vrot.slane %v254_v2, %v2081_v39 }
 0x1df   :  { %v1585_v38 = vpack.c.bf16 %v450_v50, %v446_v31  ;;  %v411_v60 = vpop.permute.xlu1 %410  ;;  %v1584_v22 = vpack.c.bf16 %v449_v44, %v445_v62  ;;  %v362_v56 = vmul.f32 %v351_v63, %v331_v34  ;;  %v870_v50 = vld [vmem:[#allocation9 + $0x7] ss:$8 sm:$0xf] }
 0x1e0   :  { %v414_v6 = vsel %vm412_vm13, %v2050_v12, %v411_v60  ;;  %v420_v9 = vsel %vm412_vm13, %v411_v60, %v2046_v10  ;;  %v325_v30 = vpop.permute.xlu0 %324  ;;  %v343_v12 = vrot.slane %v338_v43, %v2074_v29  ;;  %v355_v10 = vrot.slane %v338_v43, %v2084_v41 }
 0x1e1   :  { %v448_v7 = vmul.f32 %v427_v5, %v420_v9  ;;  %v451_v58 = vmul.f32 %v439_v51, %v414_v6  ;;  %1176 = vmatprep.subr.bf16.mxu0 %v1584_v22  ;;  %v335_v4 = vsel %vm328_vm14, %v325_v30, %v2048_v11  ;;  %v329_v35 = vsel %vm328_vm14, %v2052_v13, %v325_v30 }
 0x1e2   :  { %v360_v8 = vmul.f32 %v343_v12, %v335_v4  ;;  %v363_v0 = vmul.f32 %v355_v10, %v329_v35  ;;  %v875_v6 = vrot.slane %v870_v50, %v2074_v29 }
 0x1e3   :  { %v1583_v49 = vpack.c.bf16 %v448_v7, %v444_v55  ;;  %v319_v52 = vpop.permute.xlu1 %318  ;;  %v1586_v27 = vpack.c.bf16 %v451_v58, %v447_v61 }
 0x1e4   :  { %v332_v45 = vsel %vm328_vm14, %v319_v52, %v2058_v18  ;;  %v334_v48 = vsel %vm328_vm14, %v2054_v16, %v319_v52  ;;  %v232_v25 = vpop.permute.xlu0 %231 }
 0x1e5   :  { %v365_v54 = vmul.f32 %v347_v1, %v334_v48  ;;  %v366_v28 = vmul.f32 %v351_v63, %v332_v45  ;;  %1177 = vmatpush1.bf16.msra.mxu0 %v1583_v49  ;;  %1219 = vmatprep.subr.bf16.mxu1 %v1586_v27  ;;  %v250_v40 = vsel %vm245_vm15, %v2056_v17, %v232_v25  ;;  %v2365_v48 = vld [vmem:[#allocation18_spill] sm:$0xff] }
 0x1e6   :  { %1220 = vmatpush1.bf16.msra.mxu1 %v1585_v38  ;;  %v248_v57 = vsel %vm245_vm15, %v232_v25, %v2060_v19  ;;  %v277_v31 = vmul.f32 %v263_v37, %v250_v40 }
 0x1e7   :  { %v1581_v53 = vpack.c.bf16 %v366_v28, %v362_v56  ;;  %v327_v42 = vpop.permute.xlu1 %326  ;;  %v1580_v15 = vpack.c.bf16 %v365_v54, %v361_v33  ;;  %v278_v3 = vmul.f32 %v267_v59, %v248_v57 }
 0x1e8   :  { %v330_v11 = vsel %vm328_vm14, %v2058_v18, %v327_v42  ;;  %v336_v13 = vsel %vm328_vm14, %v327_v42, %v2054_v16  ;;  %v240_v5 = vpop.permute.xlu0 %239  ;;  %v259_v18 = vrot.slane %v254_v2, %v2074_v29  ;;  %v271_v16 = vrot.slane %v254_v2, %v2084_v41 }
 0x1e9   :  { %v364_v62 = vmul.f32 %v343_v12, %v336_v13  ;;  %v367_v51 = vmul.f32 %v355_v10, %v330_v11  ;;  %1178 = vmatprep.subr.bf16.mxu0 %v1580_v15  ;;  %v252_v38 = vsel %vm245_vm15, %v240_v5, %v2056_v17  ;;  %v246_v55 = vsel %vm245_vm15, %v2060_v19, %v240_v5  ;;  %v2364_v10 = vld [vmem:[#allocation19_spill] sm:$0xff]  ;;  %v2367_v5 = vld [vmem:[#allocation17_spill] sm:$0xff] }
 0x1ea   :  { %v276_v61 = vmul.f32 %v259_v18, %v252_v38  ;;  %v879_v17 = vrot.slane %v870_v50, %v2076_v32  ;;  %v279_v7 = vmul.f32 %v271_v16, %v246_v55  ;;  %v883_v12 = vrot.slane %v870_v50, %v2081_v39  ;;  %1289 = vperm.xlu0 %1635, %v2367_v5  }
 0x1eb   :  { %v1579_v46 = vpack.c.bf16 %v364_v62, %v360_v8  ;;  %v234_v43 = vpop.permute.xlu1 %233  ;;  %v1582_v14 = vpack.c.bf16 %v367_v51, %v363_v0  ;;  %v2366_v13 = vmov 0   ;;  %v2368_v0 = vld [vmem:[#allocation16_spill] sm:$0xff] }
 0x1ec   :  { %v249_v36 = vsel %vm245_vm15, %v234_v43, %v2066_v23  ;;  %v251_v44 = vsel %vm245_vm15, %v2062_v20, %v234_v43  ;;  %v849_v22 = vpop.permute.xlu0 %848  ;;  %1285 = vperm.xlu1 %1634, %v2368_v0   ;;  %v1391_v0 = vld [vmem:[#allocation3 + $0x28] sm:$0xff] }
 0x1ed   :  { %v281_v1 = vmul.f32 %v263_v37, %v251_v44  ;;  %v282_v60 = vmul.f32 %v267_v59, %v249_v36  ;;  %1179 = vmatpush1.bf16.msra.mxu0 %v1579_v46  ;;  %1221 = vmatprep.subr.bf16.mxu1 %v1582_v14  ;;  %v865_v58 = vsel %vm860_vm1, %v2064_v21, %v849_v22 }
 0x1ee   :  { %1222 = vmatpush1.bf16.msra.mxu1 %v1581_v53  ;;  %v863_v32 = vsel %vm860_vm1, %v849_v22, %v2068_v24  ;;  %v892_v33 = vmul.f32 %v875_v6, %v865_v58 }
 0x1ef   :  { %v1577_v63 = vpack.c.bf16 %v282_v60, %v278_v3  ;;  %v242_v9 = vpop.permute.xlu1 %241  ;;  %v1576_v30 = vpack.c.bf16 %v281_v1, %v277_v31  ;;  %v893_v25 = vmul.f32 %v879_v17, %v863_v32 }
 0x1f0   :  { %v247_v47 = vsel %vm245_vm15, %v2066_v23, %v242_v9  ;;  %v253_v19 = vsel %vm245_vm15, %v242_v9, %v2062_v20  ;;  %v857_v23 = vpop.permute.xlu0 %856  ;;  %v887_v20 = vrot.slane %v870_v50, %v2084_v41 }
 0x1f1   :  { %v280_v29 = vmul.f32 %v259_v18, %v253_v19  ;;  %v283_v34 = vmul.f32 %v271_v16, %v247_v47  ;;  %1180 = vmatprep.subr.bf16.mxu0 %v1576_v30  ;;  %v861_v39 = vsel %vm860_vm1, %v2068_v24, %v857_v23  ;;  %v867_v41 = vsel %vm860_vm1, %v857_v23, %v2064_v21  ;;  %v1639_v21 = vld [vmem:[%s2346_s2] ss:$8 sps:$4 sm:$0xff]  }
 0x1f2   :  { %v894_v42 = vmul.f32 %v883_v12, %v861_v39  ;;  %v895_v15 = vmul.f32 %v887_v20, %v867_v41  ;;  %v1261_v18 = vstv %s1534_s15  ;;  %v1411_v39 = vstv %s1538_s17 }
 0x1f3   :  { %v1575_v49 = vpack.c.bf16 %v280_v29, %v276_v61  ;;  %v851_v52 = vpop.permute.xlu1 %850  ;;  %v1578_v27 = vpack.c.bf16 %v283_v34, %v279_v7 }
 0x1f4   :  { %v864_v45 = vsel %vm860_vm1, %v851_v52, %v2364_v10  ;;  %v866_v2 = vsel %vm860_vm1, %v2365_v48, %v851_v52 }
 0x1f5   :  { %v896_v56 = vmul.f32 %v875_v6, %v866_v2  ;;  %v897_v4 = vmul.f32 %v879_v17, %v864_v45  ;;  %1181 = vmatpush1.bf16.msra.mxu0 %v1575_v49  ;;  %1223 = vmatprep.subr.bf16.mxu1 %v1578_v27  ;;  %v1640_v27 = vld [vmem:[%s2347_s3] sm:$0xff]   ;;  %s1760_s3 = smov [#allocation11]  }
 0x1f6   :  { %1224 = vmatpush1.bf16.msra.mxu1 %v1577_v63  ;;  %v1386_v2 = vld [vmem:[#allocation3] sm:$0xff]  ;;  %s1441_s18 = sshll.u32 %s1760_s3, 4  ;;  %s1442_s18 = int_to_ptr.vmem [resolvable:$true] %s1441_s18 }
 0x1f7   :  { %v1607_v54 = vpack.c.bf16 %v896_v56, %v892_v33  ;;  %v859_v28 = vpop.permute.xlu1 %858  ;;  %v1608_v35 = vpack.c.bf16 %v897_v4, %v893_v25  ;;  %v1387_v4 = vld [vmem:[#allocation3 + $0x8] sm:$0xff]  ;;  %s1713_s19 = scalar_lea.vmem %s1442_s18, 1024  ;;  %p1718_p7 = scmp.lt.s32.totalorder %s1442_s18, %s1442_s18 }
 0x1f8   :  { %v862_v53 = vsel %vm860_vm1, %v2364_v10, %v859_v28  ;;  %v868_v37 = vsel %vm860_vm1, %v859_v28, %v2365_v48  ;;  %v1388_v28 = vld [vmem:[#allocation3 + $0x10] sm:$0xff]  ;;  %p1714_p6 = scmp.ne.s32.totalorder %s1442_s18, %s1713_s19  ;;  %p1719_p8 = scmp.lt.s32.totalorder %s1713_s19, %s1713_s19 }
 0x1f9   :  { %v898_v8 = vmul.f32 %v883_v12, %v862_v53  ;;  %v899_v24 = vmul.f32 %v887_v20, %v868_v37  ;;  %1196 = vmatprep.subr.bf16.mxu0 %v1608_v35 }
 0x1fa   :  { %1197 = vmatpush2.bf16.msra.mxu0 %v1607_v54  ;;  %p1720_p9 = por %p1719_p8, %p1718_p7 }
 0x1fb   :  { %v1609_v59 = vpack.c.bf16 %v898_v8, %v894_v42  ;;  %v1610_v11 = vpack.c.bf16 %v899_v24, %v895_v15  ;;  %v1389_v8 = vld [vmem:[#allocation3 + $0x18] sm:$0xff] }
 0x1fc   :  { %p1721_p10 = pnand %p1720_p9, %p1714_p6 }
 0x1fd   :  { %1199 = vmatmul.mubr.bf16.vlgmr.msra.gmra.mxu0 %v1639_v21  ;;  %1239 = vmatprep.subr.bf16.mxu1 %v1610_v11  ;;  %v968_v40 = vpop.permute.xlu0 %967 }
 0x1fe   :  { %1240 = vmatpush2.bf16.msra.mxu1 %v1609_v59  ;;  %1332 = vmatprep.mubr.bf16.mxu0 %v2366_v13  ;;  %v1390_v59 = vld [vmem:[#allocation3 + $0x20] sm:$0xff] }
 0x201   :  { %1242 = vmatmul.mubr.bf16.vlgmr.msra.gmra.mxu1 %v1639_v21 }
 0x202   :  { %1375 = vmatprep.mubr.bf16.mxu1 %v2366_v13 }
 0x204   :  { %v972_v46 = vpop.permute.xlu1 %971 }
 0x265   :  { %v1290_v41 = vpop.permute.xlu0 %1289 }
 0x267   :  { %v1286_v45 = vpop.permute.xlu1 %1285 }
 0x2bd   :  { %v1200_v62 = vpop.f32.mrf.mxu0 }
 0x2be   :  { %v1201_v57 = vadd.f32 %v1200_v62, %v968_v40 }
 0x2bf   :  { %v1202_v51 = vpop.f32.mrf.mxu0 }
 0x2c0   :  { %v1203_v43 = vadd.f32 %v1202_v51, %v968_v40  ;;  %v1262_v36 = vmul.f32 %v1261_v18, %v1201_v57  ;;  %vm1252_vm2 = vcmp.gt.f32.partialorder %v1201_v57, 0.0 }
 0x2c1   :  { %v1204_v14 = vpop.f32.mrf.mxu0  ;;  %v1243_v31 = vpop.f32.mrf.mxu1 }
 0x2c2   :  { %v1205_v16 = vadd.f32 %v1204_v14, %v972_v46  ;;  %v1244_v38 = vadd.f32 %v1243_v31, %v968_v40  ;;  %v1263_v55 = vmul.f32 %v1261_v18, %v1203_v43  ;;  %vm1253_vm4 = vcmp.gt.f32.partialorder %v1203_v43, 0.0  ;;  %v1392_v14 = vld [vmem:[#allocation3 + $0x30] sm:$0xff] }
 0x2c3   :  { %v1206_v44 = vpop.f32.mrf.mxu0  ;;  %v1245_v50 = vpop.f32.mrf.mxu1  ;;  %v1270_v6 = vsel %vm1252_vm2, %v1201_v57, %v1262_v36 }
 0x2c4   :  { %vm1256_vm3 = vcmp.gt.f32.partialorder %v1205_v16, 0.0  ;;  %v1266_v3 = vmul.f32 %v1261_v18, %v1205_v16  ;;  %v1207_v1 = vadd.f32 %v1206_v44, %v972_v46  ;;  %v1246_v60 = vadd.f32 %v1245_v50, %v968_v40 }
 0x2c5   :  { %v1247_v22 = vpop.f32.mrf.mxu1  ;;  %v1264_v7 = vmul.f32 %v1261_v18, %v1244_v38  ;;  %v1271_v58 = vsel %vm1253_vm4, %v1203_v43, %v1263_v55  ;;  %vm1254_vm8 = vcmp.gt.f32.partialorder %v1244_v38, 0.0 }
 0x2c6   :  { %v1248_v63 = vadd.f32 %v1247_v22, %v972_v46  ;;  %v1274_v9 = vsel %vm1256_vm3, %v1205_v16, %v1266_v3  ;;  %vm1257_vm5 = vcmp.gt.f32.partialorder %v1207_v1, 0.0  ;;  %v1267_v30 = vmul.f32 %v1261_v18, %v1207_v1  ;;  %v1393_v22 = vld [vmem:[#allocation3 + $0x38] sm:$0xff] }
 0x2c7   :  { %v1249_v61 = vpop.f32.mrf.mxu1  ;;  %v1265_v17 = vmul.f32 %v1261_v18, %v1246_v60  ;;  %vm1255_vm7 = vcmp.gt.f32.partialorder %v1246_v60, 0.0  ;;  %v1280_v49 = vpack.c.bf16 %v1274_v9, %v1270_v6  ;;  %v1272_v33 = vsel %vm1254_vm8, %v1244_v38, %v1264_v7 }
 0x2c8   :  { %vm1258_vm6 = vcmp.gt.f32.partialorder %v1248_v63, 0.0  ;;  %v1268_v47 = vmul.f32 %v1261_v18, %v1248_v63  ;;  %v1250_v19 = vadd.f32 %v1249_v61, %v972_v46  ;;  %v1275_v29 = vsel %vm1257_vm5, %v1207_v1, %v1267_v30 }
 0x2c9   :  { %v1281_v32 = vpack.c.bf16 %v1275_v29, %v1271_v58  ;;  %v1273_v23 = vsel %vm1255_vm7, %v1246_v60, %v1265_v17 }
 0x2ca   :  { %vm1259_vm9 = vcmp.gt.f32.partialorder %v1250_v19, 0.0  ;;  %v1269_v34 = vmul.f32 %v1261_v18, %v1250_v19  ;;  %v1276_v12 = vsel %vm1258_vm6, %v1248_v63, %v1268_v47 }
 0x2cb   :  { %1314 = vmatprep.subr.bf16.mxu0 %v1281_v32  ;;  %v1282_v10 = vpack.c.bf16 %v1276_v12, %v1272_v33 }
 0x2cc   :  { %v1277_v52 = vsel %vm1259_vm9, %v1250_v19, %v1269_v34  ;;  %1315 = vmatpush1.bf16.msra.mxu0 %v1280_v49 }
 0x2cd   :  { %v1283_v20 = vpack.c.bf16 %v1277_v52, %v1273_v23 }
 0x2cf   :  { %1357 = vmatprep.subr.bf16.mxu1 %v1283_v20  ;;  %1536 = vmatmul.mubr.msk.bf16.vlgmr.msra.gmra.mxu0 %vm111_vm0, %v1640_v27 }
 0x2d0   :  { %1358 = vmatpush1.bf16.msra.mxu1 %v1282_v10 }
 0x2d3   :  { %1537 = vmatmul.mubr.msk.bf16.vlgmr.msra.gmra.mxu1 %vm111_vm0, %v1640_v27 }
 0x38f   :  { %v1334_v48 = vpop.f32.mrf.mxu0 }
 0x390   :  { %v1335_v25 = vadd.f32 %v1334_v48, %v1286_v45 }
 0x391   :  { %v1336_v56 = vpop.f32.mrf.mxu0 }
 0x392   :  { %v1337_v35 = vadd.f32 %v1336_v56, %v1286_v45  ;;  %v1394_v53 = vadd.f32 %v1386_v2, %v1335_v25 }
 0x393   :  { %v1377_v54 = vpop.f32.mrf.mxu1  ;;  %v1338_v37 = vpop.f32.mrf.mxu0 }
 0x394   :  { %v1378_v42 = vadd.f32 %v1377_v54, %v1286_v45  ;;  %v1395_v24 = vadd.f32 %v1387_v4, %v1337_v35  ;;  %vm1402_vm10 = vcmp.gt.f32.partialorder %v1394_v53, 0.0  ;;  %v1412_v21 = vmul.f32 %v1411_v39, %v1394_v53 }
 0x395   :  { %v1379_v15 = vpop.f32.mrf.mxu1  ;;  %v1339_v11 = vadd.f32 %v1338_v37, %v1290_v41  ;;  %v1340_v5 = vpop.f32.mrf.mxu0 }
 0x396   :  { %v1380_v13 = vadd.f32 %v1379_v15, %v1286_v45  ;;  %v1396_v26 = vadd.f32 %v1388_v28, %v1378_v42  ;;  %vm1403_vm0 = vcmp.gt.f32.partialorder %v1395_v24, 0.0  ;;  %v1413_v40 = vmul.f32 %v1411_v39, %v1395_v24 }
 0x397   :  { %v1420_v62 = vsel %vm1402_vm10, %v1394_v53, %v1412_v21  ;;  %v1341_v51 = vadd.f32 %v1340_v5, %v1290_v41  ;;  %v1381_v57 = vpop.f32.mrf.mxu1  ;;  %v1398_v43 = vadd.f32 %v1390_v59, %v1339_v11 }
 0x398   :  { %v1397_v46 = vadd.f32 %v1389_v8, %v1380_v13  ;;  %vm1404_vm11 = vcmp.gt.f32.partialorder %v1396_v26, 0.0  ;;  %v1414_v18 = vmul.f32 %v1411_v39, %v1396_v26  ;;  %1428 = vst [vmem:[#allocation11] sm:$0xff] %v1420_v62  ;;  %v1421_v31 = vsel %vm1403_vm0, %v1395_v24, %v1413_v40 }
 0x399   :  { %v1399_v16 = vadd.f32 %v1391_v0, %v1341_v51  ;;  %v1382_v36 = vadd.f32 %v1381_v57, %v1290_v41  ;;  %v1383_v44 = vpop.f32.mrf.mxu1  ;;  %1429 = vst [vmem:[#allocation11 + $0x8] sm:$0xff] %v1421_v31  ;;  %vm1406_vm13 = vcmp.gt.f32.partialorder %v1398_v43, 0.0  ;;  %v1416_v38 = vmul.f32 %v1411_v39, %v1398_v43 }
 0x39a   :  { %vm1405_vm12 = vcmp.gt.f32.partialorder %v1397_v46, 0.0  ;;  %v1415_v50 = vmul.f32 %v1411_v39, %v1397_v46  ;;  %v1422_v3 = vsel %vm1404_vm11, %v1396_v26, %v1414_v18  ;;  %v1384_v63 = vadd.f32 %v1383_v44, %v1290_v41 }
 0x39b   :  { %1430 = vst [vmem:[#allocation11 + $0x10] sm:$0xff] %v1422_v3  ;;  %vm1407_vm14 = vcmp.gt.f32.partialorder %v1399_v16, 0.0  ;;  %v1417_v1 = vmul.f32 %v1411_v39, %v1399_v16  ;;  %v1400_v60 = vadd.f32 %v1392_v14, %v1382_v36  ;;  %v1424_v6 = vsel %vm1406_vm13, %v1398_v43, %v1416_v38 }
 0x39c   :  { %v1423_v55 = vsel %vm1405_vm12, %v1397_v46, %v1415_v50  ;;  %1432 = vst [vmem:[#allocation11 + $0x20] sm:$0xff] %v1424_v6  ;;  %v1401_v61 = vadd.f32 %v1393_v22, %v1384_v63 }
 0x39d   :  { %1431 = vst [vmem:[#allocation11 + $0x18] sm:$0xff] %v1423_v55  ;;  %v1425_v9 = vsel %vm1407_vm14, %v1399_v16, %v1417_v1  ;;  %vm1408_vm15 = vcmp.gt.f32.partialorder %v1400_v60, 0.0  ;;  %v1418_v30 = vmul.f32 %v1411_v39, %v1400_v60 }
 0x39e   :  { %1433 = vst [vmem:[#allocation11 + $0x28] sm:$0xff] %v1425_v9  ;;  %vm1409_vm1 = vcmp.gt.f32.partialorder %v1401_v61, 0.0  ;;  %v1419_v47 = vmul.f32 %v1411_v39, %v1401_v61 }
 0x39f   :  { %v1426_v17 = vsel %vm1408_vm15, %v1400_v60, %v1418_v30 }
 0x3a0   :  { %1434 = vst [vmem:[#allocation11 + $0x30] sm:$0xff] %v1426_v17  ;;  %v1427_v19 = vsel %vm1409_vm1, %v1401_v61, %v1419_v47 }
 0x3a1   :  { %1435 = vst [vmem:[#allocation11 + $0x38] sm:$0xff] %v1427_v19 }
 0x3a2   :  { %1724 = shalt.err (!%p1721_p10)
}
 0x3a3   :  { %1447 = dma.vmem_to_hbm [thread:$0]  %s1442_s18, 1024, %s2351_s7, [#allocation5], %s1745_s11, %s1745_s11, %s1746_s12  }
 0x3a4   :  { %1739 = dma.done.wait [#allocation5], 1024  }
 0x3a5   :  { %1740 = vsyncadd [#allocation5], 4294966272 }
 0x3a6   :  { %1451 = vsyncpa [#allocation4], 1 }
 0x3a7   :  { %1452 = vsyncpa [#allocation8], 1 }
 0x3a8   :  { %1453 = vsyncpa [#allocation5], 1 }
 0x3a9   :  { %1454 = vsyncpa [#allocation6], 1 }

</bundles_post_ra>
